<compile_context>
chip_gen: v6e
topology: v6e:2x2x1
jax: 0.10.0
libtpu: 0.0.40
codegen_flags: <defaults>
</compile_context>

<pallas_src>
import math

import jax
import jax.numpy as jnp
from jax import lax
from jax.experimental import pallas as pl
from jax.experimental.pallas import tpu as pltpu


# ----------------------------- Pallas kernels ------------------------------

def _f32(x):
    # Avoid emitting no-op casts on already-f32 refs.
    return x if x.dtype == jnp.float32 else x.astype(jnp.float32)


def _logits_kernel_norm(q_ref, k_ref, o_ref):
    """Normalized dot-product logits for one key tile.

    q_ref: (b, d)   -- full query block (resident across the grid)
    k_ref: (tn, d)  -- tile of keys
    o_ref: (b, tn)  -- logits tile
    """
    q = q_ref[...]
    k = k_ref[...]
    qf = _f32(q)
    kf = _f32(k)
    # rsqrt + multiply (no sqrt, no divide); fold the inverse norms into the
    # dot operands so the post-dot path is just the store (no (tn,1).T).
    inv_q = lax.rsqrt(jnp.sum(qf * qf, axis=-1, keepdims=True))      # (b, 1)
    inv_k = lax.rsqrt(jnp.sum(kf * kf, axis=-1, keepdims=True))      # (tn, 1)
    q_n = (qf * inv_q).astype(q.dtype)
    k_n = (kf * inv_k).astype(k.dtype)
    s = lax.dot_general(q_n, k_n, (((1,), (1,)), ((), ())),
                        preferred_element_type=jnp.float32)          # MXU, (b, tn)
    o_ref[...] = s.astype(o_ref.dtype)


def _logits_kernel_plain(q_ref, k_ref, o_ref):
    q = q_ref[...]
    k = k_ref[...]
    s = lax.dot_general(q, k, (((1,), (1,)), ((), ())),
                        preferred_element_type=jnp.float32)
    o_ref[...] = s.astype(o_ref.dtype)


# --------------------------- tiling / wrapper -------------------------------

def _choose_key_tile(n, d, b, tile_cap, vmem_budget_bytes):
    """Largest lane-aligned key tile that fits the VMEM budget (f32 sizing)."""
    lane = 128
    # Double-buffered K tile + double-buffered (b, tn) output tile, per unit tn.
    per_tn_bytes = (2 * d + 2 * b) * 4
    resident_bytes = b * d * 4                      # resident query block
    budget = max(vmem_budget_bytes - resident_bytes, lane * per_tn_bytes)
    vmem_tn = (budget // per_tn_bytes) // lane * lane
    tn = int(max(lane, min(tile_cap, vmem_tn)))

    n_pad128 = ((n + lane - 1) // lane) * lane
    if n_pad128 <= tn:
        half = n_pad128 // 2
        if half >= lane and half % lane == 0:
            tn = half            # keep >= 2 parallel grid steps (v7x megacore)
        else:
            tn = n_pad128        # tiny key set: single full block
    n_pad = ((n + tn - 1) // tn) * tn
    return tn, n_pad


def pairwise_logits(query_repr, key_repr, normalize_dotproduct,
                    *, tile_cap=2048, vmem_budget_bytes=24 << 20):
    """logits[i, j] = <q_i, k_j>  (optionally / (||q_i|| ||k_j||)).

    query_repr: (b, d)
    key_repr:   (n, d)   (n = b for minibatch keys, key_support_size for support)
    returns:    (b, n)  float32
    """
    b, d = query_repr.shape
    n, d2 = key_repr.shape
    assert d == d2

    tn, n_pad = _choose_key_tile(n, d, b, tile_cap, vmem_budget_bytes)
    if n_pad != n:
        # Pad with 1.0 (not 0.0) so rsqrt of padded rows stays finite; padded
        # columns are sliced off below.
        key_repr = jnp.pad(key_repr, ((0, n_pad - n), (0, 0)),
                           constant_values=1.0)

    kernel = _logits_kernel_norm if normalize_dotproduct else _logits_kernel_plain

    out = pl.pallas_call(
        kernel,
        out_shape=jax.ShapeDtypeStruct((b, n_pad), jnp.float32),
        grid_spec=pltpu.PrefetchScalarGridSpec(
            num_scalar_prefetch=0,
            grid=(n_pad // tn,),
            in_specs=[
                pl.BlockSpec((b, d), lambda j: (0, 0)),    # queries: resident block
                pl.BlockSpec((tn, d), lambda j: (j, 0)),   # keys: tile j
            ],
            out_specs=pl.BlockSpec((b, tn), lambda j: (0, j)),
        ),
        compiler_params=pltpu.CompilerParams(
            dimension_semantics=("parallel",),
            vmem_limit_bytes=48 << 20,                     # above scoped defaults, < v7x physical
        ),
    )(query_repr, key_repr)

    return out if n_pad == n else out[:, :n]


# ------------------------- EncoderPredictor wrapper ------------------------

class EncoderPredictorPallas:
    """No-encoder / no-classifier configuration of EncoderPredictor."""

    def __init__(self, key_support_size, d_model, vocab_size,
                 SOS, PAD, NULL, num_attributes, num_attr_vals,
                 repr_pos, normalize_dotproduct, rng):
        self.key_support_size = key_support_size
        self.d_model = d_model
        self.vocab_size = vocab_size
        self.SOS = SOS
        self.PAD = PAD
        self.NULL = NULL
        self.num_attributes = num_attributes
        self.num_attr_vals = num_attr_vals
        self.repr_pos = repr_pos
        self.normalize_dotproduct = normalize_dotproduct

        k1, k2 = jax.random.split(rng)
        # inp_query_layer.scaled_embed.embedding.weight : (vocab_size, d_model)
        self.W_q_emb = (jax.random.normal(k1, (vocab_size, d_model), jnp.float32)
                        * 0.02)
        # inp_key_layer.scaled_embed.embedding.weight : (key_support_size, d_model)
        # (encode_all_keys asserts this shape when key_encoder is None)
        self.W_k_emb = (jax.random.normal(k2, (key_support_size, d_model), jnp.float32)
                        * 0.02)
        self._scale = math.sqrt(d_model)

    # --- raw (unscaled) gathers; seq_len == 1 so this is just a row take ---
    # TODO(synk): the embedding gather could be fused into the kernel via
    # num_scalar_prefetch + pl.Element row index_maps; left as XLA glue since
    # it is negligible at these batch sizes.

    def _gather_query(self, X):         # X: (b, 1) int32
        return jnp.take(self.W_q_emb, X[:, 0], axis=0)        # (b, d_model)

    def _gather_key(self, X):           # X: (b, 1) int32
        return jnp.take(self.W_k_emb, X[:, 0], axis=0)        # (b, d_model)

    # --- encode_* matching the original module (scale applied) ---

    def encode_query(self, X):
        return self._gather_query(X) * self._scale            # (b, d_model)

    def encode_key(self, X):
        return self._gather_key(X) * self._scale              # (b, d_model)

    def encode_all_keys(self):
        # With no key_encoder the module returns the raw embedding weight.
        return self.W_k_emb                                    # (key_support_size, d_model)

    # TODO(synk): transformer query/key encoders and the MLP classifier head
    # are external submodules of the original model and are not instantiated
    # in this (None, None, None) configuration.

    # --- forward paths ---

    def forward(self, X_query, X_key, from_support):
        if from_support:
            return self.forward_norm_support(X_query)
        assert X_key is not None
        return self.forward_norm_minibatch(X_query, X_key)

    def forward_norm_minibatch(self, X_query, X_key):
        if self.normalize_dotproduct:
            # sqrt(d_model) scaling cancels in the normalized dot product.
            q = self._gather_query(X_query)                    # (b, d)
            k = self._gather_key(X_key)                        # (b, d)
        else:
            q = self.encode_query(X_query)
            k = self.encode_key(X_key)
        return pairwise_logits(q, k, self.normalize_dotproduct)   # (b, b)

    def forward_norm_support(self, X_query):
        if self.normalize_dotproduct:
            q = self._gather_query(X_query)                    # (b, d)
        else:
            q = self.encode_query(X_query)
        k = self.encode_all_keys()                             # (key_support_size, d)
        return pairwise_logits(q, k, self.normalize_dotproduct)   # (b, key_support_size)


# ------------------------------ reference ----------------------------------

def _ref_logits(q, k, normalize):
    s = q @ k.T
    if normalize:
        qn = jnp.linalg.norm(q, axis=-1, keepdims=True)
        kn = jnp.linalg.norm(k, axis=-1, keepdims=True)
        s = s / (qn * kn.T)
    return s


# --------------------------------- main -------------------------------------

if __name__ == "__main__":
    rng = jax.random.PRNGKey(0)
    r_params, r_q, r_k = jax.random.split(rng, 3)

    # Small shapes consistent with the module.
    b = 8
    d_model = 32
    vocab_size = 20
    key_support_size = 256
    num_attributes, num_attr_vals = 4, 4
    SOS, PAD, NULL = vocab_size - 3, vocab_size - 2, vocab_size - 1

    model = EncoderPredictorPallas(
        key_support_size=key_support_size, d_model=d_model,
        vocab_size=vocab_size, SOS=SOS, PAD=PAD, NULL=NULL,
        num_attributes=num_attributes, num_attr_vals=num_attr_vals,
        repr_pos=0, normalize_dotproduct=True, rng=r_params)

    # Token inputs: (b, query_len=1) / (b, key_len=1)
    X_query = jax.random.randint(r_q, (b, 1), 0, vocab_size, dtype=jnp.int32)
    X_key = jax.random.randint(r_k, (b, 1), 0, key_support_size, dtype=jnp.int32)

    # Path 1: normalize over minibatch keys -> (b, b)   (exercises key padding 8 -> 128)
    logits_mb = model.forward(X_query, X_key, from_support=False)
    logits_mb = jax.block_until_ready(logits_mb)

    # Path 2: normalize over full key support -> (b, key_support_size)  (2 key tiles)
    logits_sup = model.forward(X_query, None, from_support=True)
    logits_sup = jax.block_until_ready(logits_sup)

    # Correctness check against a pure-JAX reference using the ORIGINAL module
    # semantics (scaled query/key embeddings, raw key-support weights).
    q_scaled = model.encode_query(X_query)
    k_mb_scaled = model.encode_key(X_key)
    k_all = model.encode_all_keys()
    ref_mb = _ref_logits(q_scaled, k_mb_scaled, True)
    ref_sup = _ref_logits(q_scaled, k_all, True)
    assert logits_mb.shape == (b, b)
    assert logits_sup.shape == (b, key_support_size)
    assert jnp.allclose(logits_mb, ref_mb, atol=1e-3, rtol=1e-3)
    assert jnp.allclose(logits_sup, ref_sup, atol=1e-3, rtol=1e-3)

    # Also exercise the unnormalized kernel path.
    logits_plain = pairwise_logits(q_scaled, k_all, False)
    logits_plain = jax.block_until_ready(logits_plain)
    ref_plain = _ref_logits(q_scaled, k_all, False)
    assert logits_plain.shape == (b, key_support_size)
    assert jnp.allclose(logits_plain, ref_plain, atol=1e-3, rtol=1e-3)

    print("KERNEL_OK")
</pallas_src>

<mosaic_0001>
module attributes {stable_mosaic.version = 11 : i64} {
  func.func @_logits_kernel_norm(%arg0: i32, %arg1: memref<8x32xf32, #tpu.memory_space<vmem>>, %arg2: memref<128x32xf32, #tpu.memory_space<vmem>>, %arg3: memref<8x128xf32, #tpu.memory_space<vmem>>) attributes {dimension_semantics = [#tpu.dimension_semantics<parallel>], iteration_bounds = array<i64: 1>, scalar_prefetch = 0 : i64, scratch_operands = 0 : i64, tpu.core_type = #tpu.core_type<tc>, window_params = [{pipeline_mode = #tpu.pipeline_mode<synchronous>, transform_indices = @transform_0, window_bounds = array<i64: 8, 32>}, {transform_indices = @transform_1, window_bounds = array<i64: 128, 32>}, {transform_indices = @transform_2, window_bounds = array<i64: 8, 128>}]} {
    %c0 = arith.constant 0 : index
    %c0_0 = arith.constant 0 : index
    %0 = vector.load %arg1[%c0, %c0_0] : memref<8x32xf32, #tpu.memory_space<vmem>>, vector<8x32xf32>
    %c0_1 = arith.constant 0 : index
    %c0_2 = arith.constant 0 : index
    %1 = vector.load %arg2[%c0_1, %c0_2] : memref<128x32xf32, #tpu.memory_space<vmem>>, vector<128x32xf32>
    %2 = arith.mulf %0, %0 : vector<8x32xf32>
    %cst = arith.constant dense<0.000000e+00> : vector<8xf32>
    %3 = vector.multi_reduction <add>, %2, %cst [1] : vector<8x32xf32> to vector<8xf32>
    %4 = vector.shape_cast %3 : vector<8xf32> to vector<8x1xf32>
    %5 = math.rsqrt %4 : vector<8x1xf32>
    %6 = arith.mulf %1, %1 : vector<128x32xf32>
    %cst_3 = arith.constant dense<0.000000e+00> : vector<128xf32>
    %7 = vector.multi_reduction <add>, %6, %cst_3 [1] : vector<128x32xf32> to vector<128xf32>
    %8 = vector.shape_cast %7 : vector<128xf32> to vector<128x1xf32>
    %9 = math.rsqrt %8 : vector<128x1xf32>
    %10 = vector.broadcast %5 : vector<8x1xf32> to vector<8x32xf32>
    %11 = arith.mulf %0, %10 : vector<8x32xf32>
    %12 = vector.broadcast %9 : vector<128x1xf32> to vector<128x32xf32>
    %13 = arith.mulf %1, %12 : vector<128x32xf32>
    %cst_4 = arith.constant dense<0.000000e+00> : vector<8x128xf32>
    %14 = tpu.matmul %11, %13, %cst_4 {dimension_numbers = #tpu.dot_dimension_numbers<[1], [1], [0], [0], [0, 0, 1, 0], [], []>} : vector<8x32xf32>, vector<128x32xf32>, vector<8x128xf32> -> vector<8x128xf32>
    %c0_5 = arith.constant 0 : index
    %c0_6 = arith.constant 0 : index
    %15 = vector.load %arg3[%c0_5, %c0_6] : memref<8x128xf32, #tpu.memory_space<vmem>>, vector<8x128xf32>
    tpu.vector_store %arg3[%c0_5, %c0_6], %14 {strides = array<i32>} : memref<8x128xf32, #tpu.memory_space<vmem>>, vector<8x128xf32>,
    return
  }
  func.func @transform_0(%arg0: i32) -> (i32, i32) {
    %c0_i32 = arith.constant 0 : i32
    %c0_i32_0 = arith.constant 0 : i32
    %c0_i32_1 = arith.constant 0 : i32
    return %c0_i32, %c0_i32_0 : i32, i32
  }
  func.func @transform_1(%arg0: i32) -> (i32, i32) {
    %c0_i32 = arith.constant 0 : i32
    %c0_i32_0 = arith.constant 0 : i32
    return %arg0, %c0_i32 : i32, i32
  }
  func.func @transform_2(%arg0: i32) -> (i32, i32) {
    %c0_i32 = arith.constant 0 : i32
    %c0_i32_0 = arith.constant 0 : i32
    return %c0_i32, %arg0 : i32, i32
  }
}

</mosaic_0001>

<bundles_post_ra>
// kernel: tpu_custom_call.1
= control target key start
LH: loop header
LB: loop body
LE: loop exit
PB: predicated region body
PF: predicated region fallthrough
CT: control target
= control target key end

     0   :  { %vm30_vm0 = vcmask 261120   ;;  %s604_s0 = inlined_call_operand.vmem [shape: f32[8,32], index: 0, kind: input, shape index: {}]   ;;  %s605_s1 = inlined_call_operand.vmem [shape: f32[128,32], index: 1, kind: input, shape index: {}]   ;;  %s606_s2 = inlined_call_operand.hbm [shape: f32[8,128], index: 2, kind: output, shape index: {}]  }
   0x1   :  { %v417_v0 = vld [vmem:[%s605_s1 + $0x78] sm:$0xff]  ;;  %v422_v1 = vld [vmem:[%s605_s1 + $0x70] sm:$0xff]  ;;  %v427_v2 = vld [vmem:[%s605_s1 + $0x68] sm:$0xff] }
   0x2   :  { %v50_v3 = vmul.f32 %v417_v0, %v417_v0  ;;  %v49_v4 = vmul.f32 %v422_v1, %v422_v1  ;;  %v48_v5 = vmul.f32 %v427_v2, %v427_v2  ;;  %v438_v6 = vld [vmem:[%s605_s1 + $0x60] sm:$0xff]  ;;  %v445_v8 = vld [vmem:[%s605_s1 + $0x58] sm:$0xff]  ;;  %v450_v9 = vld [vmem:[%s605_s1 + $0x50] sm:$0xff] }
   0x3   :  { %v47_v7 = vmul.f32 %v438_v6, %v438_v6  ;;  %v46_v14 = vmul.f32 %v445_v8, %v445_v8  ;;  %v45_v15 = vmul.f32 %v450_v9, %v450_v9 }
   0x4   :  { %v96_v10 = vsel %vm30_vm0, %v50_v3, 0.0  ;;  %v90_v11 = vsel %vm30_vm0, %v48_v5, 0.0  ;;  %v93_v12 = vsel %vm30_vm0, %v49_v4, 0.0 }
   0x5   :  { %97 = vadd.xlane.f32.xlu0 %v96_v10  ;;  %91 = vadd.xlane.f32.xlu1 %v90_v11  ;;  %v87_v13 = vsel %vm30_vm0, %v47_v7, 0.0 }
   0x6   :  { %7 = vsyncpa [#allocation3], 0  ;;  %v463_v16 = vld [vmem:[%s605_s1 + $0x48] sm:$0xff]  ;;  %v468_v17 = vld [vmem:[%s605_s1 + $0x40] sm:$0xff]  ;;  %v84_v18 = vsel %vm30_vm0, %v46_v14, 0.0  ;;  %v81_v19 = vsel %vm30_vm0, %v45_v15, 0.0 }
   0x7   :  { %v44_v20 = vmul.f32 %v463_v16, %v463_v16  ;;  %v43_v21 = vmul.f32 %v468_v17, %v468_v17  ;;  %v479_v22 = vld [vmem:[%s605_s1 + $0x38] sm:$0xff]  ;;  %v484_v23 = vld [vmem:[%s605_s1 + $0x30] sm:$0xff]  ;;  %v495_v28 = vld [vmem:[%s605_s1 + $0x28] sm:$0xff]  ;;  %v396_v40 = vmov 0.0   ;;  %vm397_vm1 = vmmov 0  }
   0x8   :  { %v42_v26 = vmul.f32 %v479_v22, %v479_v22  ;;  %v41_v27 = vmul.f32 %v484_v23, %v484_v23  ;;  %v500_v29 = vld [vmem:[%s605_s1 + $0x20] sm:$0xff]  ;;  %v40_v32 = vmul.f32 %v495_v28, %v495_v28  ;;  %v511_v34 = vld [vmem:[%s605_s1 + $0x18] sm:$0xff]  ;;  %v516_v35 = vld [vmem:[%s605_s1 + $0x10] sm:$0xff]  ;;  %302 = vmatprep.subr.mxu0 %v396_v40  ;;  %334 = vmatprep.mubr.msk.f32.mxu0 %vm397_vm1, %v396_v40 }
   0x9   :  { %94 = vadd.xlane.f32.xlu0 %v93_v12  ;;  %88 = vadd.xlane.f32.xlu1 %v87_v13  ;;  %v78_v24 = vsel %vm30_vm0, %v44_v20, 0.0  ;;  %v75_v25 = vsel %vm30_vm0, %v43_v21, 0.0  ;;  %v39_v33 = vmul.f32 %v500_v29, %v500_v29  ;;  %v38_v38 = vmul.f32 %v511_v34, %v511_v34  ;;  %v528_v41 = vld [vmem:[%s605_s1 + $0x8] sm:$0xff]  ;;  %v533_v42 = vld [vmem:[%s605_s1] sm:$0xff] }
   0xa   :  { %v72_v30 = vsel %vm30_vm0, %v42_v26, 0.0  ;;  %v69_v31 = vsel %vm30_vm0, %v41_v27, 0.0  ;;  %v66_v36 = vsel %vm30_vm0, %v40_v32, 0.0  ;;  %v37_v39 = vmul.f32 %v516_v35, %v516_v35  ;;  %v544_v47 = vld [vmem:[%s604_s0] sm:$0xff]  ;;  %s398_s0 = smov [#allocation2]  }
   0xb   :  { %v63_v37 = vsel %vm30_vm0, %v39_v33, 0.0  ;;  %v60_v43 = vsel %vm30_vm0, %v38_v38, 0.0  ;;  %v36_v45 = vmul.f32 %v528_v41, %v528_v41  ;;  %v35_v46 = vmul.f32 %v533_v42, %v533_v42  ;;  %s260_s1 = sshll.u32 %s398_s0, 4  ;;  %s261_s1 = int_to_ptr.vmem [resolvable:$true] %s260_s1 }
   0xc   :  { %v57_v44 = vsel %vm30_vm0, %v37_v39, 0.0  ;;  %v29_v50 = vmul.f32 %v544_v47, %v544_v47  ;;  %s374_s15 = scalar_lea.vmem %s261_s1, 128  ;;  %p379_p1 = scmp.lt.s32.totalorder %s261_s1, %s261_s1 }
   0xd   :  { %85 = vadd.xlane.f32.xlu0 %v84_v18  ;;  %82 = vadd.xlane.f32.xlu1 %v81_v19  ;;  %v54_v48 = vsel %vm30_vm0, %v36_v45, 0.0  ;;  %v51_v49 = vsel %vm30_vm0, %v35_v46, 0.0  ;;  %p375_p0 = scmp.ne.s32.totalorder %s261_s1, %s374_s15  ;;  %p380_p2 = scmp.lt.s32.totalorder %s374_s15, %s374_s15 }
   0xe   :  { %v31_v51 = vsel %vm30_vm0, %v29_v50, 0.0 }
   0xf   :  { %p381_p3 = por %p380_p2, %p379_p1 }
  0x11   :  { %79 = vadd.xlane.f32.xlu0 %v78_v24  ;;  %76 = vadd.xlane.f32.xlu1 %v75_v25  ;;  %p382_p4 = pnand %p381_p3, %p375_p0 }
  0x15   :  { %73 = vadd.xlane.f32.xlu0 %v72_v30  ;;  %70 = vadd.xlane.f32.xlu1 %v69_v31 }
  0x19   :  { %67 = vadd.xlane.f32.xlu0 %v66_v36  ;;  %64 = vadd.xlane.f32.xlu1 %v63_v37 }
  0x1d   :  { %61 = vadd.xlane.f32.xlu0 %v60_v43  ;;  %58 = vadd.xlane.f32.xlu1 %v57_v44 }
  0x21   :  { %55 = vadd.xlane.f32.xlu0 %v54_v48  ;;  %52 = vadd.xlane.f32.xlu1 %v51_v49 }
  0x25   :  { %32 = vadd.xlane.f32.xlu0 %v31_v51 }
  0x8e   :  { %v98_v52 = vpop.xlane.xlu0 %97  ;;  %v92_v53 = vpop.xlane.xlu1 %91 }
  0x8f   :  { %340 = vrsqrt.f32 %v98_v52 }
  0x90   :  { %342 = vrsqrt.f32 %v92_v53 }
  0x92   :  { %v95_v54 = vpop.xlane.xlu0 %94  ;;  %v89_v55 = vpop.xlane.xlu1 %88 }
  0x93   :  { %344 = vrsqrt.f32 %v95_v54 }
  0x94   :  { %346 = vrsqrt.f32 %v89_v55 }
  0x96   :  { %v86_v56 = vpop.xlane.xlu0 %85  ;;  %v83_v58 = vpop.xlane.xlu1 %82 }
  0x97   :  { %348 = vrsqrt.f32 %v86_v56 }
  0x98   :  { %350 = vrsqrt.f32 %v83_v58 }
  0x9a   :  { %v80_v62 = vpop.xlane.xlu0 %79  ;;  %v77_v5 = vpop.xlane.xlu1 %76 }
  0x9b   :  { %352 = vrsqrt.f32 %v80_v62 }
  0x9c   :  { %v341_v57 = vpop.eup %340  ;;  %354 = vrsqrt.f32 %v77_v5 }
  0x9d   :  { %v131_v59 = vmul.f32 %v341_v57, %v417_v0  ;;  %v343_v60 = vpop.eup %342 }
  0x9e   :  { %v129_v3 = vmul.f32 %v343_v60, %v427_v2  ;;  %v74_v10 = vpop.xlane.xlu0 %73  ;;  %v71_v2 = vpop.xlane.xlu1 %70 }
  0x9f   :  { %303 = vmatpush3.xpose.msk.msra.mxu0 %vm30_vm0, %v131_v59  ;;  %356 = vrsqrt.f32 %v74_v10 }
  0xa0   :  { %v345_v61 = vpop.eup %344  ;;  %304 = vmatprep.subr.mxu0 %v396_v40  ;;  %358 = vrsqrt.f32 %v71_v2 }
  0xa1   :  { %v130_v63 = vmul.f32 %v345_v61, %v422_v1  ;;  %v347_v4 = vpop.eup %346 }
  0xa2   :  { %v128_v0 = vmul.f32 %v347_v4, %v438_v6  ;;  %v68_v6 = vpop.xlane.xlu0 %67 }
  0xa3   :  { %305 = vmatpush3.xpose.msk.msra.mxu0 %vm30_vm0, %v130_v63  ;;  %360 = vrsqrt.f32 %v68_v6 }
  0xa4   :  { %306 = vmatprep.subr.mxu0 %v396_v40  ;;  %v349_v7 = vpop.eup %348 }
  0xa5   :  { %v127_v1 = vmul.f32 %v349_v7, %v445_v8  ;;  %v351_v11 = vpop.eup %350  ;;  %v65_v8 = vpop.xlane.xlu1 %64 }
  0xa6   :  { %v126_v12 = vmul.f32 %v351_v11, %v450_v9  ;;  %362 = vrsqrt.f32 %v65_v8  ;;  %v62_v9 = vpop.xlane.xlu0 %61 }
  0xa7   :  { %307 = vmatpush3.xpose.msk.msra.mxu0 %vm30_vm0, %v129_v3  ;;  %364 = vrsqrt.f32 %v62_v9 }
  0xa8   :  { %308 = vmatprep.subr.mxu0 %v396_v40  ;;  %v353_v13 = vpop.eup %352 }
  0xa9   :  { %v125_v14 = vmul.f32 %v353_v13, %v463_v16  ;;  %v355_v15 = vpop.eup %354  ;;  %v59_v16 = vpop.xlane.xlu1 %58 }
  0xaa   :  { %v124_v18 = vmul.f32 %v355_v15, %v468_v17  ;;  %366 = vrsqrt.f32 %v59_v16  ;;  %v56_v17 = vpop.xlane.xlu0 %55 }
  0xab   :  { %309 = vmatpush3.xpose.msk.msra.mxu0 %vm30_vm0, %v128_v0  ;;  %368 = vrsqrt.f32 %v56_v17 }
  0xac   :  { %310 = vmatprep.subr.mxu0 %v396_v40  ;;  %v357_v19 = vpop.eup %356 }
  0xad   :  { %v123_v20 = vmul.f32 %v357_v19, %v479_v22  ;;  %v359_v21 = vpop.eup %358  ;;  %v53_v22 = vpop.xlane.xlu1 %52 }
  0xae   :  { %v122_v24 = vmul.f32 %v359_v21, %v484_v23  ;;  %370 = vrsqrt.f32 %v53_v22  ;;  %v33_v31 = vpop.xlane.xlu0 %32 }
  0xaf   :  { %311 = vmatpush3.xpose.msk.msra.mxu0 %vm30_vm0, %v127_v1  ;;  %372 = vrsqrt.f32 %v33_v31 }
  0xb0   :  { %312 = vmatprep.subr.mxu0 %v396_v40  ;;  %v361_v25 = vpop.eup %360 }
  0xb1   :  { %v121_v26 = vmul.f32 %v361_v25, %v495_v28 }
  0xb3   :  { %313 = vmatpush3.xpose.msk.msra.mxu0 %vm30_vm0, %v126_v12  ;;  %v363_v27 = vpop.eup %362 }
  0xb4   :  { %314 = vmatprep.subr.mxu0 %v396_v40  ;;  %v120_v30 = vmul.f32 %v363_v27, %v500_v29  ;;  %v365_v23 = vpop.eup %364 }
  0xb5   :  { %v119_v32 = vmul.f32 %v365_v23, %v511_v34 }
  0xb7   :  { %315 = vmatpush3.xpose.msk.msra.mxu0 %vm30_vm0, %v125_v14  ;;  %v367_v33 = vpop.eup %366 }
  0xb8   :  { %316 = vmatprep.subr.mxu0 %v396_v40  ;;  %v118_v28 = vmul.f32 %v367_v33, %v516_v35  ;;  %v369_v36 = vpop.eup %368 }
  0xb9   :  { %v117_v29 = vmul.f32 %v369_v36, %v528_v41 }
  0xbb   :  { %317 = vmatpush3.xpose.msk.msra.mxu0 %vm30_vm0, %v124_v18  ;;  %v371_v37 = vpop.eup %370 }
  0xbc   :  { %318 = vmatprep.subr.mxu0 %v396_v40  ;;  %v373_v38 = vpop.eup %372  ;;  %v116_v34 = vmul.f32 %v371_v37, %v533_v42 }
  0xbd   :  { %v115_v39 = vmul.f32 %v373_v38, %v544_v47 }
  0xbf   :  { %319 = vmatpush3.xpose.msk.msra.mxu0 %vm30_vm0, %v123_v20 }
  0xc0   :  { %320 = vmatprep.subr.mxu0 %v396_v40 }
  0xc3   :  { %321 = vmatpush3.xpose.msk.msra.mxu0 %vm30_vm0, %v122_v24 }
  0xc4   :  { %322 = vmatprep.subr.mxu0 %v396_v40 }
  0xc7   :  { %323 = vmatpush3.xpose.msk.msra.mxu0 %vm30_vm0, %v121_v26 }
  0xc8   :  { %324 = vmatprep.subr.mxu0 %v396_v40 }
  0xcb   :  { %325 = vmatpush3.xpose.msk.msra.mxu0 %vm30_vm0, %v120_v30 }
  0xcc   :  { %326 = vmatprep.subr.mxu0 %v396_v40 }
  0xcf   :  { %327 = vmatpush3.xpose.msk.msra.mxu0 %vm30_vm0, %v119_v32 }
  0xd0   :  { %328 = vmatprep.subr.mxu0 %v396_v40 }
  0xd3   :  { %329 = vmatpush3.xpose.msk.msra.mxu0 %vm30_vm0, %v118_v28 }
  0xd4   :  { %330 = vmatprep.subr.mxu0 %v396_v40 }
  0xd7   :  { %331 = vmatpush3.xpose.msk.msra.mxu0 %vm30_vm0, %v117_v29 }
  0xd8   :  { %332 = vmatprep.subr.mxu0 %v396_v40 }
  0xdb   :  { %333 = vmatpush3.xpose.msk.msra.mxu0 %vm30_vm0, %v116_v34 }
  0xde   :  { %335 = vmatmul.mubr.msk.f32.vlgmr.msra.gmra.mxu0 %vm30_vm0, %v115_v39 }
 0x19e   :  { %v249_v35 = vpop.f32.mrf.mxu0 }
 0x19f   :  { %253 = vst [vmem:[#allocation2] sm:$0xff] %v249_v35 }
 0x1a0   :  { %v336_v41 = vpop.f32.mrf.mxu0 }
 0x1a1   :  { %385 = shalt.err (!%p382_p4)
}
 0x1a2   :  { %263 = dma.vmem_to_hbm [thread:$0]  %s261_s1, 128, %s606_s2, [#allocation3]  }
 0x1a3   :  { %394 = dma.done.wait [#allocation3], 128  }
 0x1a4   :  { %395 = vsyncadd [#allocation3], 4294967168 }
 0x1a5   :  { %267 = vsyncpa [#allocation3], 1 }

</bundles_post_ra>
